<compile_context>
chip_gen: v7x
topology: tpu7x:2x2x1
jax: 0.10.0
libtpu: 0.0.40
codegen_flags: <defaults>
</compile_context>

<pallas_src>
import functools

import jax
import jax.numpy as jnp
from jax import lax
from jax.experimental import pallas as pl
from jax.experimental.pallas import tpu as pltpu

_LANE = 128


def _se_kernel(x_ref, w1_ref, b1_ref, w2_ref, b2_ref, o_ref, acc_ref,
               *, inv_hw, n_chunks):
    k = pl.program_id(1)                       # innermost: H*W reduction step

    @pl.when(k == 0)
    def _init():
        acc_ref[...] = jnp.zeros_like(acc_ref)

    # Hot loop (VPU-only): sum the lane-aligned chunks of this block into a
    # register-resident f32 partial, then do a single accumulator RMW per grid
    # step.  No per-step cross-lane reduce, so the next block's DMA stays
    # fully hidden behind these adds.
    def add_chunk(j, p):
        off = pl.multiple_of(j * _LANE, _LANE)
        return p + x_ref[:, :, pl.ds(off, _LANE)].astype(jnp.float32)

    partial = x_ref[:, :, pl.ds(0, _LANE)].astype(jnp.float32)
    if n_chunks <= 8:                          # short: full static unroll
        for j in range(1, n_chunks):
            partial = add_chunk(j, partial)
    else:                                      # long: bounded unroll
        partial = lax.fori_loop(1, n_chunks, add_chunk, partial, unroll=8)
    acc_ref[...] += partial

    # Epilogue: one cross-lane (XLU) reduce + two tiny matmuls + activations,
    # once per output tile.
    @pl.when(k == pl.num_programs(1) - 1)
    def _finalize():
        pooled = jnp.sum(acc_ref[...], axis=-1) * inv_hw            # (TN, C)
        h = jnp.dot(pooled, w1_ref[...],
                    preferred_element_type=jnp.float32) + b1_ref[...]
        h = jnp.maximum(h, 0.0)                                     # ReLU
        y = jnp.dot(h, w2_ref[...],
                    preferred_element_type=jnp.float32) + b2_ref[...]
        # HardSigmoid (PyTorch): clamp(y/6 + 0.5, 0, 1)
        o_ref[...] = jnp.clip(y * (1.0 / 6.0) + 0.5, 0.0, 1.0).astype(o_ref.dtype)


def _device_vmem_budget():
    """Per-x-buffer VMEM budget and vmem_limit cap, by TPU generation."""
    kind = ""
    try:
        kind = jax.devices()[0].device_kind.lower()
    except Exception:
        pass
    if "v5" in kind and ("lite" in kind or "v5e" in kind):
        # v5e: 16 MiB default scoped VMEM -> small buffers, never bump limit.
        return 3 * 1024 * 1024 + 512 * 1024, 15 * 1024 * 1024
    if "v7" in kind:
        # v7x: only 64 MiB physical VMEM per core -> leave headroom.
        return 8 * 1024 * 1024, 48 * 1024 * 1024
    # v6e / v5p / v4 etc.: plenty of VMEM -> bigger tiles, fewer grid steps.
    return 10 * 1024 * 1024, 64 * 1024 * 1024


def _pick_n_tile(n, c, itemsize, budget_per_buf, min_thw):
    """Shrink tn (not thw) to satisfy the budgets; tn must tile N cleanly."""
    if n % 8 != 0:
        return n                               # full batch (block == full dim)
    # (a) register-resident partial:  tn*C*128*4 B <= ~128 KiB (~32 vregs)
    reg_cap = max(8, (128 * 1024) // (c * _LANE * 4))
    # (b) long DMA rows:  budget/(tn*C*item) >= min_thw lanes
    dma_cap = max(8, budget_per_buf // max(1, c * itemsize * min_thw))
    # (c) v7x megacore: >= 2 grid points on the "parallel" batch axis
    core_cap = n // 2 if n >= 16 else n
    cap = min(reg_cap, dma_cap, core_cap)
    for t in (64, 48, 32, 24, 16, 8):
        if n % t == 0 and t <= cap:
            return t
    return 8


def _pick_hw_tile(hw_pad, thw_cap, max_hw_tile):
    cap = max(_LANE, (min(thw_cap, max_hw_tile) // _LANE) * _LANE)
    if hw_pad <= cap:
        return hw_pad                          # single reduction step
    thw = cap
    while hw_pad % thw != 0:                   # terminates at 128 (hw_pad%128==0)
        thw -= _LANE
    return thw


def squeeze_and_expand(x_nchw, w1, b1, w2, b2, *,
                       max_hw_tile=16384,
                       vmem_budget_per_buf=None):
    """x_nchw: (N, C, H, W); w1: (C, hidden); w2: (hidden, planes).
    Returns (N, planes, 1, 1) f32, matching the PyTorch module output."""
    N, C, H, W = x_nchw.shape
    HW = H * W
    hidden = w1.shape[1]
    planes = w2.shape[1]

    budget, limit_cap = _device_vmem_budget()
    if vmem_budget_per_buf is not None:
        budget = vmem_budget_per_buf

    itemsize = jnp.dtype(x_nchw.dtype).itemsize
    min_thw = 512 if itemsize >= 4 else 1024   # keep contiguous DMA runs long

    x_flat = x_nchw.reshape(N, C, HW)
    hw_pad = ((HW + _LANE - 1) // _LANE) * _LANE
    if hw_pad != HW:
        # Zero-pad the spatial axis to a lane multiple: the pooled sum is
        # unaffected and inv_hw below divides by the true H*W.  Keeps the
        # streamed, double-buffered path for odd spatial sizes.
        x_flat = jnp.pad(x_flat, ((0, 0), (0, 0), (0, hw_pad - HW)))

    tn = _pick_n_tile(N, C, itemsize, budget, min_thw)
    thw_cap = max(_LANE, (budget // max(1, tn * C * itemsize)) // _LANE * _LANE)
    thw = _pick_hw_tile(hw_pad, thw_cap, max_hw_tile)
    n_chunks = thw // _LANE
    grid = (N // tn, hw_pad // thw)            # reduction axis last

    w1 = w1.astype(jnp.float32)
    w2 = w2.astype(jnp.float32)
    b1_2d = b1.reshape(1, hidden).astype(jnp.float32)
    b2_2d = b2.reshape(1, planes).astype(jnp.float32)

    kernel = functools.partial(_se_kernel, inv_hw=1.0 / HW, n_chunks=n_chunks)

    # VMEM accounting: double-buffered x tile + acc scratch + weights/biases.
    x_buf = tn * C * thw * itemsize
    acc_buf = tn * C * _LANE * 4
    w_buf = (C * hidden + hidden + hidden * planes + planes) * 4
    usage = 2 * x_buf + acc_buf + 2 * (w_buf + tn * planes * 4) + (1 << 20)
    vmem_limit = None
    if usage > 12 * 1024 * 1024:
        vmem_limit = int(min(limit_cap, max(usage + (4 << 20), 32 << 20)))

    bytes_accessed = x_flat.size * itemsize + w_buf + N * planes * 4
    cost = pl.CostEstimate(
        flops=2 * N * C * hidden + 2 * N * hidden * planes + N * C * hw_pad,
        transcendentals=0,
        bytes_accessed=bytes_accessed)

    out = pl.pallas_call(
        kernel,
        out_shape=jax.ShapeDtypeStruct((N, planes), jnp.float32),
        grid=grid,
        in_specs=[
            # Note: add pipeline_mode=pl.Buffered(3) here only if an xprof
            # trace shows exposed DMA at n-tile boundaries (v6e/v7x budgets).
            pl.BlockSpec((tn, C, thw), lambda n, k: (n, 0, k)),
            pl.BlockSpec((C, hidden), lambda n, k: (0, 0)),
            pl.BlockSpec((1, hidden), lambda n, k: (0, 0)),
            pl.BlockSpec((hidden, planes), lambda n, k: (0, 0)),
            pl.BlockSpec((1, planes), lambda n, k: (0, 0)),
        ],
        out_specs=pl.BlockSpec((tn, planes), lambda n, k: (n, 0)),
        scratch_shapes=[pltpu.VMEM((tn, C, _LANE), jnp.float32)],
        compiler_params=pltpu.CompilerParams(
            dimension_semantics=("parallel", "arbitrary"),
            vmem_limit_bytes=vmem_limit),
        cost_estimate=cost,
    )(x_flat, w1, b1_2d, w2, b2_2d)

    return out.reshape(N, planes, 1, 1)


def _reference(x_nchw, w1, b1, w2, b2):
    pooled = jnp.mean(x_nchw.astype(jnp.float32), axis=(2, 3))
    h = jnp.maximum(pooled @ w1 + b1, 0.0)
    y = h @ w2 + b2
    return jnp.clip(y / 6.0 + 0.5, 0.0, 1.0)[:, :, None, None]


if __name__ == "__main__":
    # Module hyper-params (channels must be >= ratio for hidden >= 1)
    channels, planes, ratio = 32, 16, 8
    hidden = channels // ratio                      # 4
    N = 2

    key = jax.random.PRNGKey(0)
    kx, k1, k2, k3, k4, kx2 = jax.random.split(key, 6)

    # Conv2d(C, hidden, 1) weight used in matmul form (C, hidden); likewise
    # for the second conv (hidden, planes).
    w1 = 0.1 * jax.random.normal(k1, (channels, hidden), dtype=jnp.float32)
    b1 = 0.1 * jax.random.normal(k2, (hidden,), dtype=jnp.float32)
    w2 = 0.1 * jax.random.normal(k3, (hidden, planes), dtype=jnp.float32)
    b2 = 0.1 * jax.random.normal(k4, (planes,), dtype=jnp.float32)

    # (a) default tiling: single reduction step, short static-unroll chunk loop
    x_a = jax.random.normal(kx, (N, channels, 16, 16), dtype=jnp.float32)
    ref_a = _reference(x_a, w1, b1, w2, b2)
    out_a = jax.block_until_ready(squeeze_and_expand(x_a, w1, b1, w2, b2))
    assert out_a.shape == (N, planes, 1, 1)
    assert jnp.allclose(out_a, ref_a, atol=1e-5, rtol=1e-5)

    # (b) force a multi-step streamed reduction to exercise the pl.when
    #     init / accumulate / finalize paths
    out_b = jax.block_until_ready(
        squeeze_and_expand(x_a, w1, b1, w2, b2, max_hw_tile=128))
    assert jnp.allclose(out_b, ref_a, atol=1e-5, rtol=1e-5)

    # (c) odd spatial size (H*W = 1225 -> padded to 1280) exercises the
    #     zero-padding path and the bounded fori_loop (n_chunks = 10 > 8)
    x_c = jax.random.normal(kx2, (N, channels, 35, 35), dtype=jnp.float32)
    ref_c = _reference(x_c, w1, b1, w2, b2)
    out_c = jax.block_until_ready(squeeze_and_expand(x_c, w1, b1, w2, b2))
    assert out_c.shape == (N, planes, 1, 1)
    assert jnp.allclose(out_c, ref_c, atol=1e-5, rtol=1e-5)

    print("KERNEL_OK")
</pallas_src>

<mosaic_0001>
module attributes {stable_mosaic.version = 11 : i64} {
  func.func @_se_kernel(%arg0: i32, %arg1: i32, %arg2: memref<2x32x256xf32, #tpu.memory_space<vmem>>, %arg3: memref<32x4xf32, #tpu.memory_space<vmem>>, %arg4: memref<1x4xf32, #tpu.memory_space<vmem>>, %arg5: memref<4x16xf32, #tpu.memory_space<vmem>>, %arg6: memref<1x16xf32, #tpu.memory_space<vmem>>, %arg7: memref<2x16xf32, #tpu.memory_space<vmem>>, %arg8: memref<2x32x128xf32, #tpu.memory_space<vmem>>) attributes {dimension_semantics = [#tpu.dimension_semantics<parallel>, #tpu.dimension_semantics<arbitrary>], iteration_bounds = array<i64: 1, 1>, scalar_prefetch = 0 : i64, scratch_operands = 1 : i64, tpu.core_type = #tpu.core_type<tc>, window_params = [{transform_indices = @transform_0, window_bounds = array<i64: 2, 32, 256>}, {pipeline_mode = #tpu.pipeline_mode<synchronous>, transform_indices = @transform_1, window_bounds = array<i64: 32, 4>}, {pipeline_mode = #tpu.pipeline_mode<synchronous>, transform_indices = @transform_2, window_bounds = array<i64: 1, 4>}, {pipeline_mode = #tpu.pipeline_mode<synchronous>, transform_indices = @transform_3, window_bounds = array<i64: 4, 16>}, {pipeline_mode = #tpu.pipeline_mode<synchronous>, transform_indices = @transform_4, window_bounds = array<i64: 1, 16>}, {transform_indices = @transform_5, window_bounds = array<i64: 2, 16>}]} {
    %c0_i32 = arith.constant 0 : i32
    %0 = arith.cmpi eq, %arg1, %c0_i32 : i32
    %1 = arith.extui %0 : i1 to i32
    %c0_i32_0 = arith.constant 0 : i32
    %2 = arith.cmpi ne, %1, %c0_i32_0 : i32
    scf.if %2 {
      %cst = arith.constant 0.000000e+00 : f32
      %14 = vector.broadcast %cst : f32 to vector<2x32x128xf32>
      %c0_13 = arith.constant 0 : index
      %c0_14 = arith.constant 0 : index
      %c0_15 = arith.constant 0 : index
      %15 = vector.load %arg8[%c0_13, %c0_14, %c0_15] : memref<2x32x128xf32, #tpu.memory_space<vmem>>, vector<2x32x128xf32>
      tpu.vector_store %arg8[%c0_13, %c0_14, %c0_15], %14 {strides = array<i32>} : memref<2x32x128xf32, #tpu.memory_space<vmem>>, vector<2x32x128xf32>,
    } else {
    }
    %c0 = arith.constant 0 : index
    %c0_1 = arith.constant 0 : index
    %c0_2 = arith.constant 0 : index
    %3 = vector.load %arg2[%c0, %c0_1, %c0_2] : memref<2x32x256xf32, #tpu.memory_space<vmem>>, vector<2x32x128xf32>
    %c128_i32 = arith.constant 128 : i32
    %4 = tpu.assume_multiple %c128_i32, 128 : i32
    %c0_3 = arith.constant 0 : index
    %c0_4 = arith.constant 0 : index
    %5 = arith.index_cast %4 : i32 to index
    %6 = vector.load %arg2[%c0_3, %c0_4, %5] : memref<2x32x256xf32, #tpu.memory_space<vmem>>, vector<2x32x128xf32>
    %7 = arith.addf %3, %6 : vector<2x32x128xf32>
    %c0_5 = arith.constant 0 : index
    %c0_6 = arith.constant 0 : index
    %c0_7 = arith.constant 0 : index
    %8 = vector.load %arg8[%c0_5, %c0_6, %c0_7] : memref<2x32x128xf32, #tpu.memory_space<vmem>>, vector<2x32x128xf32>
    %9 = arith.addf %8, %7 : vector<2x32x128xf32>
    %c0_8 = arith.constant 0 : index
    %c0_9 = arith.constant 0 : index
    %c0_10 = arith.constant 0 : index
    %10 = vector.load %arg8[%c0_8, %c0_9, %c0_10] : memref<2x32x128xf32, #tpu.memory_space<vmem>>, vector<2x32x128xf32>
    tpu.vector_store %arg8[%c0_8, %c0_9, %c0_10], %9 {strides = array<i32>} : memref<2x32x128xf32, #tpu.memory_space<vmem>>, vector<2x32x128xf32>,
    %c0_i32_11 = arith.constant 0 : i32
    %11 = arith.cmpi eq, %arg1, %c0_i32_11 : i32
    %12 = arith.extui %11 : i1 to i32
    %c0_i32_12 = arith.constant 0 : i32
    %13 = arith.cmpi ne, %12, %c0_i32_12 : i32
    scf.if %13 {
      %c0_13 = arith.constant 0 : index
      %c0_14 = arith.constant 0 : index
      %c0_15 = arith.constant 0 : index
      %14 = vector.load %arg8[%c0_13, %c0_14, %c0_15] : memref<2x32x128xf32, #tpu.memory_space<vmem>>, vector<2x32x128xf32>
      %cst = arith.constant dense<0.000000e+00> : vector<2x32xf32>
      %15 = vector.multi_reduction <add>, %14, %cst [2] : vector<2x32x128xf32> to vector<2x32xf32>
      %cst_16 = arith.constant 3.906250e-03 : f32
      %16 = vector.broadcast %cst_16 : f32 to vector<2x32xf32>
      %17 = arith.mulf %15, %16 : vector<2x32xf32>
      %c0_17 = arith.constant 0 : index
      %c0_18 = arith.constant 0 : index
      %18 = vector.load %arg3[%c0_17, %c0_18] : memref<32x4xf32, #tpu.memory_space<vmem>>, vector<32x4xf32>
      %cst_19 = arith.constant dense<0.000000e+00> : vector<2x4xf32>
      %19 = tpu.matmul %17, %18, %cst_19 {dimension_numbers = #tpu.dot_dimension_numbers<[1], [0], [0], [1], [0, 0, 1, 1], [], []>} : vector<2x32xf32>, vector<32x4xf32>, vector<2x4xf32> -> vector<2x4xf32>
      %c0_20 = arith.constant 0 : index
      %c0_21 = arith.constant 0 : index
      %20 = vector.load %arg4[%c0_20, %c0_21] : memref<1x4xf32, #tpu.memory_space<vmem>>, vector<1x4xf32>
      %21 = vector.broadcast %20 : vector<1x4xf32> to vector<2x4xf32>
      %22 = arith.addf %19, %21 : vector<2x4xf32>
      %cst_22 = arith.constant 0.000000e+00 : f32
      %23 = vector.broadcast %cst_22 : f32 to vector<2x4xf32>
      %24 = arith.maximumf %22, %23 : vector<2x4xf32>
      %c0_23 = arith.constant 0 : index
      %c0_24 = arith.constant 0 : index
      %25 = vector.load %arg5[%c0_23, %c0_24] : memref<4x16xf32, #tpu.memory_space<vmem>>, vector<4x16xf32>
      %cst_25 = arith.constant dense<0.000000e+00> : vector<2x16xf32>
      %26 = tpu.matmul %24, %25, %cst_25 {dimension_numbers = #tpu.dot_dimension_numbers<[1], [0], [0], [1], [0, 0, 1, 1], [], []>} : vector<2x4xf32>, vector<4x16xf32>, vector<2x16xf32> -> vector<2x16xf32>
      %c0_26 = arith.constant 0 : index
      %c0_27 = arith.constant 0 : index
      %27 = vector.load %arg6[%c0_26, %c0_27] : memref<1x16xf32, #tpu.memory_space<vmem>>, vector<1x16xf32>
      %28 = vector.broadcast %27 : vector<1x16xf32> to vector<2x16xf32>
      %29 = arith.addf %26, %28 : vector<2x16xf32>
      %cst_28 = arith.constant 0.166666672 : f32
      %30 = vector.broadcast %cst_28 : f32 to vector<2x16xf32>
      %31 = arith.mulf %29, %30 : vector<2x16xf32>
      %cst_29 = arith.constant 5.000000e-01 : f32
      %32 = vector.broadcast %cst_29 : f32 to vector<2x16xf32>
      %33 = arith.addf %31, %32 : vector<2x16xf32>
      %cst_30 = arith.constant 0.000000e+00 : f32
      %cst_31 = arith.constant 1.000000e+00 : f32
      %34 = vector.broadcast %cst_30 : f32 to vector<2x16xf32>
      %35 = arith.maximumf %34, %33 : vector<2x16xf32>
      %36 = vector.broadcast %cst_31 : f32 to vector<2x16xf32>
      %37 = arith.minimumf %36, %35 : vector<2x16xf32>
      %c0_32 = arith.constant 0 : index
      %c0_33 = arith.constant 0 : index
      %38 = vector.load %arg7[%c0_32, %c0_33] : memref<2x16xf32, #tpu.memory_space<vmem>>, vector<2x16xf32>
      tpu.vector_store %arg7[%c0_32, %c0_33], %37 {strides = array<i32>} : memref<2x16xf32, #tpu.memory_space<vmem>>, vector<2x16xf32>,
    } else {
    }
    return
  }
  func.func @transform_0(%arg0: i32, %arg1: i32) -> (i32, i32, i32) {
    %c0_i32 = arith.constant 0 : i32
    %c0_i32_0 = arith.constant 0 : i32
    return %arg0, %c0_i32, %arg1 : i32, i32, i32
  }
  func.func @transform_1(%arg0: i32, %arg1: i32) -> (i32, i32) {
    %c0_i32 = arith.constant 0 : i32
    %c0_i32_0 = arith.constant 0 : i32
    %c0_i32_1 = arith.constant 0 : i32
    return %c0_i32, %c0_i32_0 : i32, i32
  }
  func.func @transform_2(%arg0: i32, %arg1: i32) -> (i32, i32) {
    %c0_i32 = arith.constant 0 : i32
    %c0_i32_0 = arith.constant 0 : i32
    %c0_i32_1 = arith.constant 0 : i32
    return %c0_i32, %c0_i32_0 : i32, i32
  }
  func.func @transform_3(%arg0: i32, %arg1: i32) -> (i32, i32) {
    %c0_i32 = arith.constant 0 : i32
    %c0_i32_0 = arith.constant 0 : i32
    %c0_i32_1 = arith.constant 0 : i32
    return %c0_i32, %c0_i32_0 : i32, i32
  }
  func.func @transform_4(%arg0: i32, %arg1: i32) -> (i32, i32) {
    %c0_i32 = arith.constant 0 : i32
    %c0_i32_0 = arith.constant 0 : i32
    %c0_i32_1 = arith.constant 0 : i32
    return %c0_i32, %c0_i32_0 : i32, i32
  }
  func.func @transform_5(%arg0: i32, %arg1: i32) -> (i32, i32) {
    %c0_i32 = arith.constant 0 : i32
    %c0_i32_0 = arith.constant 0 : i32
    return %arg0, %c0_i32 : i32, i32
  }
}

</mosaic_0001>

<bundles_post_ra>
// kernel: tpu_custom_call.1
= control target key start
LH: loop header
LB: loop body
LE: loop exit
PB: predicated region body
PF: predicated region fallthrough
CT: control target
= control target key end

     0   :  { %10 = vsyncpa [#allocation4], 0  ;;  %s550_s0 = inlined_call_operand.hbm [shape: f32[2,32,256], index: 0, kind: input, shape index: {}]   ;;  %s551_s1 = inlined_call_operand.vmem [shape: f32[32,4], index: 1, kind: input, shape index: {}]   ;;  %s552_s2 = inlined_call_operand.vmem [shape: f32[1,4], index: 2, kind: input, shape index: {}]   ;;  %s553_s3 = inlined_call_operand.vmem [shape: f32[4,16], index: 3, kind: input, shape index: {}]   ;;  %s554_s4 = inlined_call_operand.vmem [shape: f32[1,16], index: 4, kind: input, shape index: {}]   ;;  %s555_s5 = inlined_call_operand.hbm [shape: f32[2,16], index: 5, kind: output, shape index: {}]  }
   0x1   :  { %11 = vsyncpa [#allocation5], 0  ;;  %s468_s18 = smov [#allocation3]   ;;  %s420_s22 = scalar_lea.hbm %s550_s0, 2048 }
   0x2   :  { %s17_s19 = sshll.u32 %s468_s18, 4  ;;  %p421_p0 = scmp.ne.s32.totalorder %s550_s0, %s420_s22  ;;  %s18_s19 = int_to_ptr.vmem [resolvable:$true] %s17_s19 }
   0x3   :  { %p424_p1 = scmp.lt.u32.totalorder %s420_s22, %s550_s0 }
   0x5   :  { %p426_p2 = pnand %p424_p1, %p421_p0 }
   0x7   :  { %429 = shalt.err (!%p426_p2)
}
   0x8   :  { %s430_s27 = scalar_lea.vmem %s18_s19, 2048  ;;  %p435_p4 = scmp.lt.s32.totalorder %s18_s19, %s18_s19 }
   0x9   :  { %p431_p3 = scmp.ne.s32.totalorder %s18_s19, %s430_s27  ;;  %p436_p5 = scmp.lt.s32.totalorder %s430_s27, %s430_s27 }
   0xb   :  { %p437_p6 = por %p436_p5, %p435_p4 }
   0xd   :  { %p438_p7 = pnand %p437_p6, %p431_p3 }
   0xf   :  { %441 = shalt.err (!%p438_p7)
}
  0x10   :  { %s469_s28 = smov 256   ;;  %s470_s29 = smov 16  }
  0x11   :  { %23 = dma.hbm_to_vmem [thread:$0]  %s550_s0, 2048, %s18_s19, [#allocation4], %s469_s28, %s469_s28, %s470_s29  }
  0x12   :  { %464 = dma.done.wait [#allocation4], 2048  }
  0x13   :  { %465 = vsyncadd [#allocation4], 4294965248  ;;  %v51_v0 = vld [vmem:[#allocation3 + $0x40] sm:$0xff]  ;;  %v60_v1 = vld [vmem:[#allocation3 + $0x48] sm:$0xff]  ;;  %v471_v27 = vmov 0.0|0.0   ;;  %vm472_vm0 = vmmov 0   ;;  %v150_v32 = vlaneseq }
  0x14   :  { %v47_v2 = vld [vmem:[#allocation3] sm:$0xff]  ;;  %v68_v3 = vadd.f32 %v60_v1, %v51_v0  ;;  %v56_v4 = vld [vmem:[#allocation3 + $0x8] sm:$0xff]  ;;  %v52_v5 = vld [vmem:[#allocation3 + $0x50] sm:$0xff]  ;;  %407 = vmatprep.subr.bf16.mxu0 %v471_v27  ;;  %v473_v31 = vmov 0.0   ;;  %vm161_vm1 = vcmask 130112   ;;  %vm168_vm2 = vcmask 195712  }
  0x15   :  { %v61_v6 = vld [vmem:[#allocation3 + $0x58] sm:$0xff]  ;;  %v64_v7 = vadd.f32 %v56_v4, %v47_v2  ;;  %v48_v8 = vld [vmem:[#allocation3 + $0x10] sm:$0xff]  ;;  %v53_v12 = vld [vmem:[#allocation3 + $0x60] sm:$0xff]  ;;  %399 = vmatprep.mubr.msk.f32.mxu0 %vm472_vm0, %v473_v31  ;;  %402 = vmatprep.subr.mxu1 %v473_v31  ;;  %v151_v34 = vand.u32 127, %v150_v32  ;;  %v153_v39 = vshrl.u32 %v150_v32, 7  ;;  %vm175_vm3 = vcmask 261312  }
  0x16   :  { %v57_v9 = vld [vmem:[#allocation3 + $0x18] sm:$0xff]  ;;  %115 = vadd.xlane.f32.xlu1 %v68_v3  ;;  %v69_v10 = vadd.f32 %v61_v6, %v52_v5  ;;  %v62_v13 = vld [vmem:[#allocation3 + $0x68] sm:$0xff]  ;;  %v49_v14 = vld [vmem:[#allocation3 + $0x20] sm:$0xff]  ;;  %404 = vmatprep.mubr.msk.f32.mxu1 %vm472_vm0, %v473_v31  ;;  %vm196_vm4 = vcmask 1041409   ;;  %vm198_vm5 = vcmask 261120   ;;  %vm284_vm6 = vcmask 1043456  }
  0x17   :  { %107 = vadd.xlane.f32.xlu0 %v64_v7  ;;  %v65_v11 = vadd.f32 %v57_v9, %v48_v8  ;;  %v58_v15 = vld [vmem:[#allocation3 + $0x28] sm:$0xff]  ;;  %v70_v16 = vadd.f32 %v62_v13, %v53_v12  ;;  %v54_v18 = vld [vmem:[#allocation3 + $0x70] sm:$0xff]  ;;  %v63_v19 = vld [vmem:[#allocation3 + $0x78] sm:$0xff]  ;;  %v156_v36 = vadd.s32 4294967288, %v151_v34  ;;  %v163_v38 = vadd.s32 4294967280, %v151_v34 }
  0x18   :  { %v66_v17 = vadd.f32 %v58_v15, %v49_v14  ;;  %v50_v20 = vld [vmem:[#allocation3 + $0x30] sm:$0xff]  ;;  %v59_v21 = vld [vmem:[#allocation3 + $0x38] sm:$0xff]  ;;  %v71_v22 = vadd.f32 %v63_v19, %v54_v18  ;;  %v131_v24 = vld [vmem:[%s551_s1] sm:$0xff]  ;;  %v170_v43 = vadd.s32 4294967272, %v151_v34  ;;  %v154_v47 = vsub.s32 %v151_v34, %v153_v39 }
  0x19   :  { %v67_v23 = vadd.f32 %v59_v21, %v50_v20  ;;  %v132_v25 = vld [vmem:[%s551_s1 + $0x8] sm:$0xff]  ;;  %v133_v28 = vld [vmem:[%s551_s1 + $0x10] sm:$0xff]  ;;  %v134_v29 = vld [vmem:[%s551_s1 + $0x18] sm:$0xff]  ;;  %v159_v41 = vsub.s32 %v156_v36, %v153_v39  ;;  %v166_v45 = vsub.s32 %v163_v38, %v153_v39  ;;  %vm280_vm7 = vcmask 31744  }
  0x1a   :  { %117 = vadd.xlane.f32.xlu1 %v69_v10  ;;  %v408_v26 = vpack.c.bf16 %v132_v25, %v131_v24  ;;  %v411_v30 = vpack.c.bf16 %v134_v29, %v133_v28  ;;  %v173_v54 = vsub.s32 %v170_v43, %v153_v39  ;;  %v272_v9 = vld [vmem:[%s553_s3] sm:$0xf]  ;;  %s474_s3 = smov [#allocation6]   ;;  %vm362_vm8 = vcmask 123904  }
  0x1b   :  { %109 = vadd.xlane.f32.xlu0 %v65_v11  ;;  %403 = vmatpush3.msk.msra.mxu1 %vm284_vm6, %v272_v9  ;;  %v379_v10 = vld [vmem:[%s552_s2] ss:$0 sm:$0xff]  ;;  %s370_s19 = sshll.u32 %s474_s3, 4  ;;  %s371_s19 = int_to_ptr.vmem [resolvable:$true] %s370_s19 }
  0x1c   :  { %409 = vmatpush3.bf16.msra.mxu0 %v408_v26  ;;  %v381_v15 = vld [vmem:[%s554_s4] ss:$0 sm:$0xff]  ;;  %s442_s2 = scalar_lea.vmem %s371_s19, 32  ;;  %p447_p9 = scmp.lt.s32.totalorder %s371_s19, %s371_s19 }
  0x1d   :  { %410 = vmatprep.subr.bf16.mxu0 %v471_v27  ;;  %p443_p8 = scmp.ne.s32.totalorder %s371_s19, %s442_s2  ;;  %p448_p10 = scmp.lt.s32.totalorder %s442_s2, %s442_s2 }
  0x1e   :  { %119 = vadd.xlane.f32.xlu1 %v70_v16 }
  0x1f   :  { %111 = vadd.xlane.f32.xlu0 %v66_v17  ;;  %p449_p11 = por %p448_p10, %p447_p9 }
  0x20   :  { %412 = vmatpush3.bf16.msra.mxu0 %v411_v30 }
  0x21   :  { %p450_p12 = pnand %p449_p11, %p443_p8 }
  0x22   :  { %121 = vadd.xlane.f32.xlu1 %v71_v22 }
  0x23   :  { %113 = vadd.xlane.f32.xlu0 %v67_v23 }
  0xa3   :  { %v116_v33 = vpop.xlane.xlu1 %115 }
  0xa4   :  { %v108_v35 = vpop.xlane.xlu0 %107  ;;  %v127_v48 = vmul.f32 0.00390625, %v116_v33 }
  0xa5   :  { %v123_v51 = vmul.f32 0.00390625, %v108_v35 }
  0xa6   :  { %v180_v58 = vrot.slane %v127_v48, %v154_v47 }
  0xa7   :  { %v118_v37 = vpop.xlane.xlu1 %117  ;;  %v155_v62 = vrot.slane %v123_v51, %v154_v47 }
  0xa8   :  { %v110_v40 = vpop.xlane.xlu0 %109  ;;  %v128_v42 = vmul.f32 0.00390625, %v118_v37 }
  0xa9   :  { %v124_v44 = vmul.f32 0.00390625, %v110_v40 }
  0xaa   :  { %v184_v53 = vrot.slane %v128_v42, %v159_v41 }
  0xab   :  { %v120_v46 = vpop.xlane.xlu1 %119  ;;  %v160_v55 = vrot.slane %v124_v44, %v159_v41 }
  0xac   :  { %v129_v49 = vmul.f32 0.00390625, %v120_v46  ;;  %v112_v50 = vpop.xlane.xlu0 %111  ;;  %v185_v0 = vsel %vm161_vm1, %v184_v53, %v180_v58 }
  0xad   :  { %v125_v52 = vmul.f32 0.00390625, %v112_v50  ;;  %v162_v2 = vsel %vm161_vm1, %v160_v55, %v155_v62 }
  0xae   :  { %v189_v56 = vrot.slane %v129_v49, %v166_v45 }
  0xaf   :  { %v122_v57 = vpop.xlane.xlu1 %121  ;;  %v167_v59 = vrot.slane %v125_v52, %v166_v45 }
  0xb0   :  { %v130_v60 = vmul.f32 0.00390625, %v122_v57  ;;  %v114_v61 = vpop.xlane.xlu0 %113  ;;  %v190_v3 = vsel %vm168_vm2, %v189_v56, %v185_v0 }
  0xb1   :  { %v126_v63 = vmul.f32 0.00390625, %v114_v61  ;;  %v169_v5 = vsel %vm168_vm2, %v167_v59, %v162_v2 }
  0xb2   :  { %v194_v1 = vrot.slane %v130_v60, %v173_v54 }
  0xb3   :  { %v174_v4 = vrot.slane %v126_v63, %v173_v54 }
  0xb4   :  { %v195_v6 = vsel %vm175_vm3, %v194_v1, %v190_v3 }
  0xb5   :  { %v176_v7 = vsel %vm175_vm3, %v174_v4, %v169_v5 }
  0xb6   :  { %v197_v8 = vsel %vm196_vm4, %v195_v6, %v176_v7 }
  0xb7   :  { %400 = vmatmul.mubr.msk.f32.vlgmr.msra.gmra.mrb[0].mxu0 %vm198_vm5, %v197_v8 }
 0x18a   :  { %v267_v11 = vpop.f32.mrb[0].mxu0 }
 0x18b   :  { %v268_v12 = vadd.f32 %v379_v10, %v267_v11  ;;  %v401_v13 = vpop.f32.mrb[1].mxu0 }
 0x18d   :  { %v271_v14 = vmax.f32 %v268_v12, 0.0 }
 0x18f   :  { %405 = vmatmul.mubr.msk.f32.vlgmr.msra.gmra.mrb[0].mxu1 %vm280_vm7, %v271_v14 }
 0x262   :  { %v354_v16 = vpop.f32.mrb[0].mxu1 }
 0x263   :  { %v355_v17 = vadd.f32 %v381_v15, %v354_v16  ;;  %v406_v18 = vpop.f32.mrb[1].mxu1 }
 0x265   :  { %v358_v19 = vmul.f32 0.16666667, %v355_v17 }
 0x267   :  { %v359_v20 = vadd.f32 0.5, %v358_v19 }
 0x269   :  { %v360_v21 = vmax.f32 %v359_v20, 0.0 }
 0x26b   :  { %v361_v22 = vmin.f32 %v360_v21, 1.0 }
 0x26d   :  { %363 = vst.msk [vmem:[#allocation6] sm:$0x3] %vm362_vm8, %v361_v22 }
 0x26e   :  { %453 = shalt.err (!%p450_p12)
}
 0x26f   :  { %s454_s21 = scalar_lea.hbm %s555_s5, 32 }
 0x270   :  { %p455_p13 = scmp.ne.s32.totalorder %s555_s5, %s454_s21  ;;  %p458_p0 = scmp.lt.u32.totalorder %s454_s21, %s555_s5 }
 0x272   :  { %p460_p1 = pnand %p458_p0, %p455_p13 }
 0x274   :  { %463 = shalt.err (!%p460_p1)
}
 0x275   :  { %373 = dma.vmem_to_hbm [thread:$0]  %s371_s19, 32, %s555_s5, [#allocation5]  }
 0x276   :  { %466 = dma.done.wait [#allocation5], 32  }
 0x277   :  { %467 = vsyncadd [#allocation5], 4294967264 }
 0x278   :  { %377 = vsyncpa [#allocation4], 1 }
 0x279   :  { %378 = vsyncpa [#allocation5], 1 }

</bundles_post_ra>
